<compile_context>
chip_gen: v5e
topology: v5e:2x2
jax: 0.10.0
libtpu: 0.0.40
codegen_flags: <defaults>
</compile_context>

<pallas_src>
import jax
import jax.numpy as jnp
from jax.experimental import pallas as pl
from jax.experimental.pallas import tpu as pltpu


# ---------------------------------------------------------------------------
# Kernels
# ---------------------------------------------------------------------------

def _conv_gemm_kernel(xcols_ref, w_ref, b_ref, out_ref):
    # xcols_ref: (1, 9*C, Tt)  im2col columns for this (batch, spatial tile)
    # w_ref:     (O, 9*C)      conv weight flattened as (kh, kw, c) -> row
    # b_ref:     (O, 1)
    # out_ref:   (1, O, Tt)
    acc = jnp.dot(w_ref[...], xcols_ref[0],
                  preferred_element_type=jnp.float32)           # single MXU GEMM
    out_ref[0] = (acc + b_ref[...]).astype(out_ref.dtype)


def _avgpool_kernel(xq_ref, out_ref):
    # xq_ref: (1, 4, C, Tt)  the four stride-2 shifted views of the input
    # out_ref: (1, C, Tt)
    x = xq_ref[0].astype(jnp.float32)
    out_ref[0] = ((x[0] + x[1] + x[2] + x[3]) * 0.25).astype(out_ref.dtype)


# ---------------------------------------------------------------------------
# Wrappers
# ---------------------------------------------------------------------------

def _pick_spatial_tile(t, cap=512):
    """Lane-dim tile size: full extent if small/irregular, else a multiple of 128."""
    if t <= cap or t % 128 != 0:
        return t
    for cand in range(cap, 127, -128):
        if t % cand == 0:
            return cand
    return t


@jax.jit
def downsample_conv2d(x, weight, bias):
    """Conv2d(C, O, kernel=3, stride=2, padding=1) on NCHW input via Pallas."""
    B, C, H, W = x.shape
    O = weight.shape[0]
    H_out = (H - 1) // 2 + 1
    W_out = (W - 1) // 2 + 1
    T_out = H_out * W_out

    # ---- trace-time layout plumbing (no FLOPs): pad + im2col, (kh,kw,c) order
    x_pad = jnp.pad(x, ((0, 0), (0, 0), (1, 1), (1, 1)))
    cols = []
    for kh in range(3):
        for kw in range(3):
            tap = x_pad[:, :,
                        kh:kh + 2 * (H_out - 1) + 1:2,
                        kw:kw + 2 * (W_out - 1) + 1:2]           # (B, C, H_out, W_out)
            cols.append(tap.reshape(B, C, T_out))
    xcols = jnp.concatenate(cols, axis=1)                        # (B, 9C, T_out)
    w_mat = jnp.transpose(weight, (0, 2, 3, 1)).reshape(O, 9 * C)
    b_col = bias.reshape(O, 1)

    tile_t = _pick_spatial_tile(T_out)
    grid = (B, T_out // tile_t)

    out = pl.pallas_call(
        _conv_gemm_kernel,
        out_shape=jax.ShapeDtypeStruct((B, O, T_out), x.dtype),
        grid=grid,
        in_specs=[
            pl.BlockSpec((1, 9 * C, tile_t), lambda b, t: (b, 0, t)),   # im2col cols
            pl.BlockSpec((O, 9 * C), lambda b, t: (0, 0)),              # weight (const)
            pl.BlockSpec((O, 1), lambda b, t: (0, 0)),                  # bias (const)
        ],
        out_specs=pl.BlockSpec((1, O, tile_t), lambda b, t: (b, 0, t)),
        compiler_params=pltpu.CompilerParams(
            dimension_semantics=("parallel", "parallel")),
    )(xcols, w_mat, b_col)
    return out.reshape(B, O, H_out, W_out)


@jax.jit
def downsample_avgpool2d(x):
    """AvgPool2d(kernel=2, stride=2) on NCHW input via Pallas."""
    B, C, H, W = x.shape
    H_out, W_out = H // 2, W // 2
    T_out = H_out * W_out
    xc = x[:, :, :2 * H_out, :2 * W_out]
    parts = [xc[:, :, ph::2, pw::2].reshape(B, 1, C, T_out)
             for ph in (0, 1) for pw in (0, 1)]
    xq = jnp.concatenate(parts, axis=1)                          # (B, 4, C, T_out)

    tile_t = _pick_spatial_tile(T_out)
    grid = (B, T_out // tile_t)

    out = pl.pallas_call(
        _avgpool_kernel,
        out_shape=jax.ShapeDtypeStruct((B, C, T_out), x.dtype),
        grid=grid,
        in_specs=[pl.BlockSpec((1, 4, C, tile_t), lambda b, t: (b, 0, 0, t))],
        out_specs=pl.BlockSpec((1, C, tile_t), lambda b, t: (b, 0, t)),
        compiler_params=pltpu.CompilerParams(
            dimension_semantics=("parallel", "parallel")),
    )(xq)
    return out.reshape(B, C, H_out, W_out)


def downsample_forward(x, *, use_conv, weight=None, bias=None):
    """Forward pass of Downsample (dims=2). Mirrors the PyTorch module."""
    if use_conv:
        return downsample_conv2d(x, weight, bias)
    return downsample_avgpool2d(x)
# TODO(synk): dims=1 and dims=3 (stride (1, 2, 2)) variants are not implemented;
# the same per-tap GEMM / parity-split patterns apply.


# ---------------------------------------------------------------------------
# Pure-JAX references
# ---------------------------------------------------------------------------

def _conv_ref(x, w, b):
    out = jax.lax.conv_general_dilated(
        x, w, window_strides=(2, 2), padding=((1, 1), (1, 1)),
        dimension_numbers=('NCHW', 'OIHW', 'NCHW'))
    return out + b.reshape(1, -1, 1, 1)


def _pool_ref(x):
    B, C, H, W = x.shape
    xc = x[:, :, :H // 2 * 2, :W // 2 * 2]
    return xc.reshape(B, C, H // 2, 2, W // 2, 2).mean(axis=(3, 5))


if __name__ == "__main__":
    B, C, H, W = 2, 8, 16, 16
    O = 16                              # use_conv allows out_channels != channels

    key = jax.random.PRNGKey(0)
    kx, kw, kb = jax.random.split(key, 3)
    x = jax.random.normal(kx, (B, C, H, W), dtype=jnp.float32)
    weight = jax.random.normal(kw, (O, C, 3, 3), dtype=jnp.float32) * 0.1
    bias = jax.random.normal(kb, (O,), dtype=jnp.float32) * 0.1

    # use_conv=True path: Conv2d(C, O, 3, stride=2, padding=1)
    out_conv = downsample_forward(x, use_conv=True, weight=weight, bias=bias)
    jax.block_until_ready(out_conv)
    ref_conv = _conv_ref(x, weight, bias)
    assert out_conv.shape == (B, O, H // 2, W // 2)
    assert jnp.allclose(out_conv, ref_conv, atol=1e-4, rtol=1e-4)

    # use_conv=False path: AvgPool2d(2, 2) (channels preserved)
    out_pool = downsample_forward(x, use_conv=False)
    jax.block_until_ready(out_pool)
    ref_pool = _pool_ref(x)
    assert out_pool.shape == (B, C, H // 2, W // 2)
    assert jnp.allclose(out_pool, ref_pool, atol=1e-5, rtol=1e-5)

    print("KERNEL_OK")
</pallas_src>

<mosaic_0001>
module attributes {stable_mosaic.version = 11 : i64} {
  func.func @_conv_gemm_kernel(%arg0: i32, %arg1: i32, %arg2: memref<1x72x64xf32, #tpu.memory_space<vmem>>, %arg3: memref<16x72xf32, #tpu.memory_space<vmem>>, %arg4: memref<16x1xf32, #tpu.memory_space<vmem>>, %arg5: memref<1x16x64xf32, #tpu.memory_space<vmem>>) attributes {dimension_semantics = [#tpu.dimension_semantics<parallel>, #tpu.dimension_semantics<parallel>], iteration_bounds = array<i64: 2, 1>, scalar_prefetch = 0 : i64, scratch_operands = 0 : i64, tpu.core_type = #tpu.core_type<tc>, window_params = [{transform_indices = @transform_0, window_bounds = array<i64: 1, 72, 64>}, {pipeline_mode = #tpu.pipeline_mode<synchronous>, transform_indices = @transform_1, window_bounds = array<i64: 16, 72>}, {pipeline_mode = #tpu.pipeline_mode<synchronous>, transform_indices = @transform_2, window_bounds = array<i64: 16, 1>}, {transform_indices = @transform_3, window_bounds = array<i64: 1, 16, 64>}]} {
    %c0 = arith.constant 0 : index
    %c0_0 = arith.constant 0 : index
    %0 = vector.load %arg3[%c0, %c0_0] : memref<16x72xf32, #tpu.memory_space<vmem>>, vector<16x72xf32>
    %c0_1 = arith.constant 0 : index
    %c0_2 = arith.constant 0 : index
    %c0_3 = arith.constant 0 : index
    %1 = vector.load %arg2[%c0_1, %c0_2, %c0_3] : memref<1x72x64xf32, #tpu.memory_space<vmem>>, vector<1x72x64xf32>
    %2 = vector.shape_cast %1 : vector<1x72x64xf32> to vector<72x64xf32>
    %cst = arith.constant dense<0.000000e+00> : vector<16x64xf32>
    %3 = tpu.matmul %0, %2, %cst {dimension_numbers = #tpu.dot_dimension_numbers<[1], [0], [0], [1], [0, 0, 1, 1], [], []>} : vector<16x72xf32>, vector<72x64xf32>, vector<16x64xf32> -> vector<16x64xf32>
    %c0_4 = arith.constant 0 : index
    %c0_5 = arith.constant 0 : index
    %4 = vector.load %arg4[%c0_4, %c0_5] : memref<16x1xf32, #tpu.memory_space<vmem>>, vector<16x1xf32>
    %5 = vector.broadcast %4 : vector<16x1xf32> to vector<16x64xf32>
    %6 = arith.addf %3, %5 : vector<16x64xf32>
    %c0_6 = arith.constant 0 : index
    %c0_7 = arith.constant 0 : index
    %c0_8 = arith.constant 0 : index
    %7 = vector.load %arg5[%c0_6, %c0_7, %c0_8] : memref<1x16x64xf32, #tpu.memory_space<vmem>>, vector<1x16x64xf32>
    %8 = vector.shape_cast %7 : vector<1x16x64xf32> to vector<16x64xf32>
    %9 = vector.shape_cast %6 : vector<16x64xf32> to vector<1x16x64xf32>
    tpu.vector_store %arg5[%c0_6, %c0_7, %c0_8], %9 {strides = array<i32>} : memref<1x16x64xf32, #tpu.memory_space<vmem>>, vector<1x16x64xf32>,
    return
  }
  func.func @transform_0(%arg0: i32, %arg1: i32) -> (i32, i32, i32) {
    %c0_i32 = arith.constant 0 : i32
    %c0_i32_0 = arith.constant 0 : i32
    return %arg0, %c0_i32, %arg1 : i32, i32, i32
  }
  func.func @transform_1(%arg0: i32, %arg1: i32) -> (i32, i32) {
    %c0_i32 = arith.constant 0 : i32
    %c0_i32_0 = arith.constant 0 : i32
    %c0_i32_1 = arith.constant 0 : i32
    return %c0_i32, %c0_i32_0 : i32, i32
  }
  func.func @transform_2(%arg0: i32, %arg1: i32) -> (i32, i32) {
    %c0_i32 = arith.constant 0 : i32
    %c0_i32_0 = arith.constant 0 : i32
    %c0_i32_1 = arith.constant 0 : i32
    return %c0_i32, %c0_i32_0 : i32, i32
  }
  func.func @transform_3(%arg0: i32, %arg1: i32) -> (i32, i32, i32) {
    %c0_i32 = arith.constant 0 : i32
    %c0_i32_0 = arith.constant 0 : i32
    return %arg0, %c0_i32, %arg1 : i32, i32, i32
  }
}

</mosaic_0001>

<bundles_post_ra>
// kernel: downsample_conv2d.1
= control target key start
LH: loop header
LB: loop body
LE: loop exit
PB: predicated region body
PF: predicated region fallthrough
CT: control target
= control target key end

     0   :  { %s435_s12 = smov 0   ;;  %s437_s13 = smov 0   ;;  %s484_s0 = inlined_call_operand.vmem [shape: f32[2,72,64], index: 0, kind: input, shape index: {}]   ;;  %s485_s1 = inlined_call_operand.vmem [shape: f32[16,72], index: 1, kind: input, shape index: {}]   ;;  %s486_s2 = inlined_call_operand.vmem [shape: f32[16,1], index: 2, kind: input, shape index: {}]   ;;  %s487_s3 = inlined_call_operand.vmem [shape: f32[2,16,64], index: 3, kind: output, shape index: {}]  }
   0x1   :  { %s439_s14 = smov 0  }
   0x2 LB: > { %s25_s15 = sadd.s32 1, %s408_s13  ;;  %p345_p0 = scmp.ge.s32.totalorder %s412_s14, 1  ;;  %s412_s14 = sphi %s439_s14, %s13_s14   ;;  %s408_s13 = sphi %s437_s13, %s489_s13   ;;  %s404_s12 = sphi %s435_s12, %s488_s12  }
   0x3   : > { %p27_p1 = scmp.ge.s32.totalorder %s25_s15, 2  ;;  %p156_p2 = scmp.lt.s32.totalorder %s412_s14, 3 }
   0x5   : > { %s491_s15 = smov (%p27_p1, %s25_s15), 0  ;;  %p157_p3 = pnand %p345_p0, %p156_p2 }
   0x6   : > { %p186_p4 = scmp.lt.s32.totalorder (!%p157_p3), %s404_s12, 1 }
   0x7   : > { %160 = sbr.rel (%p157_p3) target bundleno = 164 (0xa4), region = 32 }
   0xc   : > { %v213_v0 = vld [vmem:[%s486_s2] sm:$0xff]  ;;  %v414_v1 = vmov 0   ;;  %s493_s12 = smov (!%p186_p4, %s404_s12), 1  ;;  %v214_v4 = vld [vmem:[%s486_s2 + $0x8] sm:$0xff]  ;;  %vm225_vm0 = vcmask 588800   ;;  %vm255_vm1 = vcmask 523264  }
   0xd   : > { %389 = vset.pattern.permute.xlu0 %v414_v1  ;;  %s363_s18 = smul.u32 72, %s493_s12  ;;  %v202_v12 = vld [vmem:[%s485_s1] sm:$0xff]  ;;  %v203_v13 = vld [vmem:[%s485_s1 + $0x8] sm:$0xff]  ;;  %s353_s28 = sshll.u32 %s493_s12, 4 }
   0xe   : > { %217 = vperm.xlu0 %389, %v213_v0   ;;  %s201_s4 = scalar_lea.vmem %s487_s3, %s353_s28 }
   0xf   : > { %s193_s21 = scalar_lea.vmem %s484_s0, %s363_s18 }
  0x10   : > { %v212_v2 = vld [vmem:[%s193_s21 + $0x40] sm:$0xff]  ;;  %v211_v3 = vld [vmem:[%s193_s21 + $0x38] sm:$0xff]  ;;  %v210_v5 = vld [vmem:[%s193_s21 + $0x30] sm:$0xff] }
  0x11   : > { %239 = vmatpush.msra.mxu0 %v212_v2  ;;  %354 = vmatpush.msra.mxu1 %v212_v2  ;;  %v209_v6 = vld [vmem:[%s193_s21 + $0x28] sm:$0xff]  ;;  %v208_v7 = vld [vmem:[%s193_s21 + $0x20] sm:$0xff]  ;;  %v207_v8 = vld [vmem:[%s193_s21 + $0x18] sm:$0xff] }
  0x12   : > { %v206_v9 = vld [vmem:[%s193_s21 + $0x10] sm:$0xff]  ;;  %v205_v10 = vld [vmem:[%s193_s21 + $0x8] sm:$0xff]  ;;  %v204_v11 = vld [vmem:[%s193_s21] sm:$0xff] }
  0x13   : > { %240 = vmatpush.msra.mxu0 %v211_v3  ;;  %355 = vmatpush.msra.mxu1 %v211_v3 }
  0x15   : > { %241 = vmatpush.msra.mxu0 %v210_v5  ;;  %356 = vmatpush.msra.mxu1 %v210_v5 }
  0x16   : > { %222 = vperm.xlu0 %389, %v214_v4  }
  0x17   : > { %242 = vmatpush.msra.mxu0 %v209_v6  ;;  %357 = vmatpush.msra.mxu1 %v209_v6 }
  0x19   : > { %243 = vmatpush.msra.mxu0 %v208_v7  ;;  %358 = vmatpush.msra.mxu1 %v208_v7 }
  0x1b   : > { %244 = vmatpush.msra.mxu0 %v207_v8  ;;  %359 = vmatpush.msra.mxu1 %v207_v8 }
  0x1d   : > { %245 = vmatpush.msra.mxu0 %v206_v9  ;;  %360 = vmatpush.msra.mxu1 %v206_v9 }
  0x1f   : > { %246 = vmatpush.msra.mxu0 %v205_v10  ;;  %361 = vmatpush.msra.mxu1 %v205_v10 }
  0x21   : > { %247 = vmatpush.msra.mxu0 %v204_v11  ;;  %362 = vmatpush.msra.mxu1 %v204_v11 }
  0x22   : > { %349 = vmatmul.msk.f32.vlgmr.msra.gmra.mxu0 %vm225_vm0, %v202_v12  ;;  %350 = vmatmul.msk.f32.vlgmr.msra.gmra.mxu1 %vm225_vm0, %v203_v13 }
  0x80   : > { %v218_v14 = vpop.permute.xlu0 %217 }
  0x88   : > { %v223_v15 = vpop.permute.xlu0 %222 }
  0x9f   : > { %v249_v16 = vpop.f32.mrf.mxu0  ;;  %v252_v17 = vpop.f32.mrf.mxu1 }
  0xa0   : > { %v250_v18 = vadd.f32 %v249_v16, %v218_v14  ;;  %v253_v19 = vadd.f32 %v252_v17, %v223_v15 }
  0xa2   : > { %256 = vst.msk [vmem:[%s201_s4] sm:$0xff] %vm255_vm1, %v250_v18 }
  0xa3   : > { %257 = vst.msk [vmem:[%s201_s4 + $0x8] sm:$0xff] %vm255_vm1, %v253_v19 }
  0xa4 PF: > { %s13_s14 = sadd.s32 1, %s412_s14   ;;  %s488_s12 = smov %s408_s13 }
  0xa5   : > { %p10_p5 = scmp.ge.s32.totalorder %s13_s14, 4   ;;  %s489_s13 = smov %s491_s15 }
  0xa7   :  { %12 = sbr.rel (!%p10_p5) target bundleno = 2 (0x2), region = 62 }

</bundles_post_ra>
